<compile_context>
chip_gen: v6e
topology: v6e:2x2x1
jax: 0.10.0
libtpu: 0.0.40
codegen_flags: <defaults>
</compile_context>

<pallas_src>
import functools

import jax
import jax.numpy as jnp
from jax import lax
from jax.experimental import pallas as pl
from jax.experimental.pallas import tpu as pltpu


def _dilated_stack_kernel(x_ref, w_ref, b_ref, o_ref, *, stack_size, t_pad, t_valid):
    # x_ref: (C, N)   N = Bb * t_pad (batch packed on the lane axis)
    # w_ref: (S, C, 2C)  fused taps: [:, :, :C] acts on x[t], [:, :, C:] acts on x[t-d]
    # b_ref: (S, C, 1)
    # o_ref: (C, N)
    x = x_ref[...].astype(jnp.float32)                       # (C, N)
    C, N = x.shape
    # time index within each packed batch segment (loop-invariant; hoisted out of the unroll)
    t_col = lax.broadcasted_iota(jnp.int32, (C, N), 1) % t_pad
    for i in range(stack_size):                              # static unroll over the stack
        d = 2 ** i
        w = w_ref[i].astype(jnp.float32)                     # (C, 2C)
        b = b_ref[i].astype(jnp.float32)                     # (C, 1)
        if d < t_valid:
            # causal shift right by d along time; zero-fill the first d samples per segment
            x_shift = pltpu.roll(x, shift=d, axis=1)
            x_shift = jnp.where(t_col >= d, x_shift, 0.0)
            x_cat = jnp.concatenate([x, x_shift], axis=0)    # (2C, N)
            x = jnp.dot(w, x_cat, preferred_element_type=jnp.float32) + b
        else:
            # dilation >= valid length: shifted tap contributes nothing -> skip its matmul
            x = jnp.dot(w[:, :C], x, preferred_element_type=jnp.float32) + b
    o_ref[...] = x.astype(o_ref.dtype)


def dilated_conv1d(x, weights, biases, *, target_lanes=2048):
    """Forward pass of the WaveNet dilated stack.

    x:       (B, C, T)
    weights: (S, 2, C, C)  weights[i, k, co, ci] == torch layer-i weight[co, ci, k]
    biases:  (S, C, 1)
    returns: (B, C, T)
    """
    B, C, T = x.shape
    S = weights.shape[0]
    LANE = 128

    t_pad = pl.cdiv(T, LANE) * LANE
    # pack enough batch elements per grid step to get a healthy lane width (multiple of 128)
    bb = max(1, min(B, max(1, target_lanes // t_pad)))
    b_pad = pl.cdiv(B, bb) * bb
    num_blocks = b_pad // bb
    n_lanes = bb * t_pad

    # (B, C, T) -> zero-pad -> (C, B_pad * T_pad) lane-major slab.  The padded region is
    # inert: causal taps only ever read earlier samples of the same segment.
    x_p = jnp.pad(x, ((0, b_pad - B), (0, 0), (0, t_pad - T)))
    x2d = jnp.transpose(x_p, (1, 0, 2)).reshape(C, b_pad * t_pad)

    # fuse the two taps: [w_t (applied to x[t]) | w_{t-d} (applied to x[t-d])]
    w_cat = jnp.concatenate([weights[:, 1], weights[:, 0]], axis=-1)   # (S, C, 2C)

    kernel = functools.partial(
        _dilated_stack_kernel, stack_size=S, t_pad=t_pad, t_valid=T)

    flops = 2 * S * C * (2 * C) * b_pad * t_pad
    bytes_accessed = (2 * x2d.size * x2d.dtype.itemsize
                      + w_cat.size * w_cat.dtype.itemsize
                      + biases.size * biases.dtype.itemsize)

    out2d = pl.pallas_call(
        kernel,
        out_shape=jax.ShapeDtypeStruct((C, b_pad * t_pad), x.dtype),
        grid_spec=pltpu.PrefetchScalarGridSpec(
            num_scalar_prefetch=0,
            grid=(num_blocks,),
            in_specs=[
                pl.BlockSpec((C, n_lanes), lambda i: (0, i)),
                pl.BlockSpec((S, C, 2 * C), lambda i: (0, 0, 0)),
                pl.BlockSpec((S, C, 1), lambda i: (0, 0, 0)),
            ],
            out_specs=pl.BlockSpec((C, n_lanes), lambda i: (0, i)),
        ),
        compiler_params=pltpu.CompilerParams(
            dimension_semantics=("parallel",)),
        cost_estimate=pl.CostEstimate(
            flops=flops, transcendentals=0, bytes_accessed=bytes_accessed),
    )(x2d, w_cat, biases)

    out = out2d.reshape(C, b_pad, t_pad).transpose(1, 0, 2)
    return out[:B, :, :T]


def _reference(x, weights, biases):
    """Plain-JAX reference matching the PyTorch forward."""
    S = weights.shape[0]
    B, C, T = x.shape
    y = x.astype(jnp.float32)
    for i in range(S):
        d = 2 ** i
        if d < T:
            y_shift = jnp.concatenate(
                [jnp.zeros((B, C, d), jnp.float32), y[:, :, :T - d]], axis=2)
        else:
            y_shift = jnp.zeros_like(y)
        w0 = weights[i, 0]
        w1 = weights[i, 1]
        y = (jnp.einsum("oc,bct->bot", w1, y)
             + jnp.einsum("oc,bct->bot", w0, y_shift)
             + biases[i][None, :, :])
    return y.astype(x.dtype)


if __name__ == "__main__":
    # Small shapes consistent with the module: Conv1d input is (batch, channels, time).
    stack_size = 3
    channel_num = 4
    batch = 2
    T = 16

    key = jax.random.PRNGKey(0)
    kx, kw, kb = jax.random.split(key, 3)

    x = jax.random.normal(kx, (batch, channel_num, T), dtype=jnp.float32)

    # PyTorch Conv1d default init: U(-sqrt(k), sqrt(k)) with k = 1/(in_channels*kernel_size)
    bound = (1.0 / (channel_num * 2)) ** 0.5
    # weights[i, k, co, ci] corresponds to torch weight[co, ci, k] of layer i
    weights = jax.random.uniform(
        kw, (stack_size, 2, channel_num, channel_num),
        minval=-bound, maxval=bound, dtype=jnp.float32)
    biases = jax.random.uniform(
        kb, (stack_size, channel_num, 1),
        minval=-bound, maxval=bound, dtype=jnp.float32)

    out = dilated_conv1d(x, weights, biases)
    out = jax.block_until_ready(out)

    ref = _reference(x, weights, biases)
    assert out.shape == x.shape
    assert jnp.allclose(out, ref, atol=1e-4, rtol=1e-4), "mismatch vs reference"

    print("KERNEL_OK")
</pallas_src>

<mosaic_0001>
module attributes {stable_mosaic.version = 11 : i64} {
  func.func @_dilated_stack_kernel(%arg0: i32, %arg1: memref<4x256xf32, #tpu.memory_space<vmem>>, %arg2: memref<3x4x8xf32, #tpu.memory_space<vmem>>, %arg3: memref<3x4x1xf32, #tpu.memory_space<vmem>>, %arg4: memref<4x256xf32, #tpu.memory_space<vmem>>) attributes {dimension_semantics = [#tpu.dimension_semantics<parallel>], iteration_bounds = array<i64: 1>, scalar_prefetch = 0 : i64, scratch_operands = 0 : i64, tpu.core_type = #tpu.core_type<tc>, window_params = [{transform_indices = @transform_0, window_bounds = array<i64: 4, 256>}, {pipeline_mode = #tpu.pipeline_mode<synchronous>, transform_indices = @transform_1, window_bounds = array<i64: 3, 4, 8>}, {pipeline_mode = #tpu.pipeline_mode<synchronous>, transform_indices = @transform_2, window_bounds = array<i64: 3, 4, 1>}, {transform_indices = @transform_3, window_bounds = array<i64: 4, 256>}]} {
    %c0 = arith.constant 0 : index
    %c0_0 = arith.constant 0 : index
    %0 = vector.load %arg1[%c0, %c0_0] : memref<4x256xf32, #tpu.memory_space<vmem>>, vector<4x256xf32>
    %1 = tpu.iota {dimensions = array<i32: 1>} : vector<4x256xi32>
    %c128_i32 = arith.constant 128 : i32
    %c0_i32 = arith.constant 0 : i32
    %2 = arith.cmpi eq, %c128_i32, %c0_i32 : i32
    %c1_i32 = arith.constant 1 : i32
    %3 = arith.select %2, %c1_i32, %c128_i32 : i32
    %4 = vector.broadcast %3 : i32 to vector<4x256xi32>
    %5 = arith.remsi %1, %4 : vector<4x256xi32>
    %c0_i32_1 = arith.constant 0 : i32
    %6 = vector.broadcast %c0_i32_1 : i32 to vector<4x256xi32>
    %7 = arith.cmpi ne, %5, %6 : vector<4x256xi32>
    %c0_i32_2 = arith.constant 0 : i32
    %8 = vector.broadcast %c0_i32_2 : i32 to vector<4x256xi32>
    %9 = arith.cmpi slt, %5, %8 : vector<4x256xi32>
    %c0_i32_3 = arith.constant 0 : i32
    %10 = arith.cmpi slt, %3, %c0_i32_3 : i32
    %11 = vector.broadcast %10 : i1 to vector<4x256xi1>
    %12 = vector.broadcast %11 : vector<4x256xi1> to vector<4x256xi1>
    %13 = arith.xori %9, %12 : vector<4x256xi1>
    %14 = arith.andi %13, %7 : vector<4x256xi1>
    %15 = vector.broadcast %3 : i32 to vector<4x256xi32>
    %16 = arith.addi %5, %15 : vector<4x256xi32>
    %17 = arith.select %14, %16, %5 : vector<4x256xi1>, vector<4x256xi32>
    %c0_4 = arith.constant 0 : index
    %c0_5 = arith.constant 0 : index
    %c0_6 = arith.constant 0 : index
    %18 = vector.load %arg2[%c0_4, %c0_5, %c0_6] : memref<3x4x8xf32, #tpu.memory_space<vmem>>, vector<1x4x8xf32>
    %19 = vector.shape_cast %18 : vector<1x4x8xf32> to vector<4x8xf32>
    %c0_7 = arith.constant 0 : index
    %c0_8 = arith.constant 0 : index
    %c0_9 = arith.constant 0 : index
    %20 = vector.load %arg3[%c0_7, %c0_8, %c0_9] : memref<3x4x1xf32, #tpu.memory_space<vmem>>, vector<1x4x1xf32>
    %21 = vector.shape_cast %20 : vector<1x4x1xf32> to vector<4x1xf32>
    %c1_i32_10 = arith.constant 1 : i32
    %22 = tpu.dynamic_rotate %0 by %c1_i32_10 dim 1 : vector<4x256xf32>, i32 -> vector<4x256xf32>
    %c1_i32_11 = arith.constant 1 : i32
    %23 = vector.broadcast %c1_i32_11 : i32 to vector<4x256xi32>
    %24 = arith.cmpi sge, %17, %23 : vector<4x256xi32>
    %cst = arith.constant 0.000000e+00 : f32
    %25 = vector.broadcast %cst : f32 to vector<4x256xf32>
    %26 = arith.select %24, %22, %25 : vector<4x256xi1>, vector<4x256xf32>
    %27 = tpu.concatenate %0, %26 in 0 : vector<4x256xf32>, vector<4x256xf32> -> vector<8x256xf32>
    %cst_12 = arith.constant dense<0.000000e+00> : vector<4x256xf32>
    %28 = tpu.matmul %19, %27, %cst_12 {dimension_numbers = #tpu.dot_dimension_numbers<[1], [0], [0], [1], [0, 0, 1, 1], [], []>} : vector<4x8xf32>, vector<8x256xf32>, vector<4x256xf32> -> vector<4x256xf32>
    %29 = vector.broadcast %21 : vector<4x1xf32> to vector<4x256xf32>
    %30 = arith.addf %28, %29 : vector<4x256xf32>
    %c1 = arith.constant 1 : index
    %c0_13 = arith.constant 0 : index
    %c0_14 = arith.constant 0 : index
    %31 = vector.load %arg2[%c1, %c0_13, %c0_14] : memref<3x4x8xf32, #tpu.memory_space<vmem>>, vector<1x4x8xf32>
    %32 = vector.shape_cast %31 : vector<1x4x8xf32> to vector<4x8xf32>
    %c1_15 = arith.constant 1 : index
    %c0_16 = arith.constant 0 : index
    %c0_17 = arith.constant 0 : index
    %33 = vector.load %arg3[%c1_15, %c0_16, %c0_17] : memref<3x4x1xf32, #tpu.memory_space<vmem>>, vector<1x4x1xf32>
    %34 = vector.shape_cast %33 : vector<1x4x1xf32> to vector<4x1xf32>
    %c2_i32 = arith.constant 2 : i32
    %35 = tpu.dynamic_rotate %30 by %c2_i32 dim 1 : vector<4x256xf32>, i32 -> vector<4x256xf32>
    %c2_i32_18 = arith.constant 2 : i32
    %36 = vector.broadcast %c2_i32_18 : i32 to vector<4x256xi32>
    %37 = arith.cmpi sge, %17, %36 : vector<4x256xi32>
    %cst_19 = arith.constant 0.000000e+00 : f32
    %38 = vector.broadcast %cst_19 : f32 to vector<4x256xf32>
    %39 = arith.select %37, %35, %38 : vector<4x256xi1>, vector<4x256xf32>
    %40 = tpu.concatenate %30, %39 in 0 : vector<4x256xf32>, vector<4x256xf32> -> vector<8x256xf32>
    %cst_20 = arith.constant dense<0.000000e+00> : vector<4x256xf32>
    %41 = tpu.matmul %32, %40, %cst_20 {dimension_numbers = #tpu.dot_dimension_numbers<[1], [0], [0], [1], [0, 0, 1, 1], [], []>} : vector<4x8xf32>, vector<8x256xf32>, vector<4x256xf32> -> vector<4x256xf32>
    %42 = vector.broadcast %34 : vector<4x1xf32> to vector<4x256xf32>
    %43 = arith.addf %41, %42 : vector<4x256xf32>
    %c2 = arith.constant 2 : index
    %c0_21 = arith.constant 0 : index
    %c0_22 = arith.constant 0 : index
    %44 = vector.load %arg2[%c2, %c0_21, %c0_22] : memref<3x4x8xf32, #tpu.memory_space<vmem>>, vector<1x4x8xf32>
    %45 = vector.shape_cast %44 : vector<1x4x8xf32> to vector<4x8xf32>
    %c2_23 = arith.constant 2 : index
    %c0_24 = arith.constant 0 : index
    %c0_25 = arith.constant 0 : index
    %46 = vector.load %arg3[%c2_23, %c0_24, %c0_25] : memref<3x4x1xf32, #tpu.memory_space<vmem>>, vector<1x4x1xf32>
    %47 = vector.shape_cast %46 : vector<1x4x1xf32> to vector<4x1xf32>
    %c4_i32 = arith.constant 4 : i32
    %48 = tpu.dynamic_rotate %43 by %c4_i32 dim 1 : vector<4x256xf32>, i32 -> vector<4x256xf32>
    %c4_i32_26 = arith.constant 4 : i32
    %49 = vector.broadcast %c4_i32_26 : i32 to vector<4x256xi32>
    %50 = arith.cmpi sge, %17, %49 : vector<4x256xi32>
    %cst_27 = arith.constant 0.000000e+00 : f32
    %51 = vector.broadcast %cst_27 : f32 to vector<4x256xf32>
    %52 = arith.select %50, %48, %51 : vector<4x256xi1>, vector<4x256xf32>
    %53 = tpu.concatenate %43, %52 in 0 : vector<4x256xf32>, vector<4x256xf32> -> vector<8x256xf32>
    %cst_28 = arith.constant dense<0.000000e+00> : vector<4x256xf32>
    %54 = tpu.matmul %45, %53, %cst_28 {dimension_numbers = #tpu.dot_dimension_numbers<[1], [0], [0], [1], [0, 0, 1, 1], [], []>} : vector<4x8xf32>, vector<8x256xf32>, vector<4x256xf32> -> vector<4x256xf32>
    %55 = vector.broadcast %47 : vector<4x1xf32> to vector<4x256xf32>
    %56 = arith.addf %54, %55 : vector<4x256xf32>
    %c0_29 = arith.constant 0 : index
    %c0_30 = arith.constant 0 : index
    %57 = vector.load %arg4[%c0_29, %c0_30] : memref<4x256xf32, #tpu.memory_space<vmem>>, vector<4x256xf32>
    tpu.vector_store %arg4[%c0_29, %c0_30], %56 {strides = array<i32>} : memref<4x256xf32, #tpu.memory_space<vmem>>, vector<4x256xf32>,
    return
  }
  func.func @transform_0(%arg0: i32) -> (i32, i32) {
    %c0_i32 = arith.constant 0 : i32
    %c0_i32_0 = arith.constant 0 : i32
    return %c0_i32, %arg0 : i32, i32
  }
  func.func @transform_1(%arg0: i32) -> (i32, i32, i32) {
    %c0_i32 = arith.constant 0 : i32
    %c0_i32_0 = arith.constant 0 : i32
    %c0_i32_1 = arith.constant 0 : i32
    %c0_i32_2 = arith.constant 0 : i32
    return %c0_i32, %c0_i32_0, %c0_i32_1 : i32, i32, i32
  }
  func.func @transform_2(%arg0: i32) -> (i32, i32, i32) {
    %c0_i32 = arith.constant 0 : i32
    %c0_i32_0 = arith.constant 0 : i32
    %c0_i32_1 = arith.constant 0 : i32
    %c0_i32_2 = arith.constant 0 : i32
    return %c0_i32, %c0_i32_0, %c0_i32_1 : i32, i32, i32
  }
  func.func @transform_3(%arg0: i32) -> (i32, i32) {
    %c0_i32 = arith.constant 0 : i32
    %c0_i32_0 = arith.constant 0 : i32
    return %c0_i32, %arg0 : i32, i32
  }
}

</mosaic_0001>

<bundles_post_ra>
// kernel: tpu_custom_call.1
= control target key start
LH: loop header
LB: loop body
LE: loop exit
PB: predicated region body
PF: predicated region fallthrough
CT: control target
= control target key end

     0   :  { %8 = vsyncpa [#allocation3], 0  ;;  %s519_s0 = inlined_call_operand.hbm [shape: f32[4,256], index: 0, kind: input, shape index: {}]   ;;  %s520_s1 = inlined_call_operand.vmem [shape: f32[3,4,8], index: 1, kind: input, shape index: {}]   ;;  %s521_s2 = inlined_call_operand.vmem [shape: f32[3,4,1], index: 2, kind: input, shape index: {}]   ;;  %s522_s3 = inlined_call_operand.hbm [shape: f32[4,256], index: 3, kind: output, shape index: {}]  }
   0x1   :  { %9 = vsyncpa [#allocation4], 0  ;;  %s445_s12 = smov [#allocation2]  }
   0x2   :  { %s16_s13 = sshll.u32 %s445_s12, 4  ;;  %s17_s13 = int_to_ptr.vmem [resolvable:$true] %s16_s13 }
   0x3   :  { %s409_s14 = scalar_lea.vmem %s17_s13, 128  ;;  %p414_p1 = scmp.lt.s32.totalorder %s17_s13, %s17_s13 }
   0x4   :  { %p410_p0 = scmp.ne.s32.totalorder %s17_s13, %s409_s14  ;;  %p415_p2 = scmp.lt.s32.totalorder %s409_s14, %s409_s14 }
   0x6   :  { %p416_p3 = por %p415_p2, %p414_p1 }
   0x8   :  { %p417_p4 = pnand %p416_p3, %p410_p0 }
   0xa   :  { %420 = shalt.err (!%p417_p4)
}
   0xb   :  { %19 = dma.hbm_to_vmem [thread:$0]  %s519_s0, 128, %s17_s13, [#allocation3]  }
   0xc   :  { %441 = dma.done.wait [#allocation3], 128  }
   0xd   :  { %442 = vsyncadd [#allocation3], 4294967168  ;;  %v446_v0 = vmov 0.0   ;;  %v27_v1 = vld [vmem:[#allocation2] sm:$0xff]  ;;  %v447_v2 = vmov 0   ;;  %s448_s19 = smov 1   ;;  %v28_v5 = vlaneseq }
   0xe   :  { %153 = vmatprep.mubr.f32.mxu0 %v446_v0  ;;  %255 = vmatprep.mubr.f32.mxu1 %v446_v0  ;;  %v56_v3 = vld [vmem:[%s521_s2] sm:$0xf]  ;;  %v58_v4 = vcombine.high %v27_v1, %v27_v1  ;;  %vm77_vm3 = vcmask 1043456   ;;  %vm85_vm4 = vcmask 64512   ;;  %s449_s21 = smov 2   ;;  %s450_s26 = smov 4  }
   0xf   :  { %398 = vset.pattern.permute.xlu1 %v447_v2  ;;  %399 = vset.pattern.permute.xlu0 %v447_v2  ;;  %v478_v6 = vand.u32 127, %v28_v5  ;;  %v55_v19 = vld [vmem:[%s520_s1] sm:$0xf]  ;;  %v386_v25 = vld [vmem:[%s521_s2 + $0x4] sm:$0xf]  ;;  %s451_s30 = smov [#allocation5]  }
  0x10   :  { %60 = vrot.lane.b32.xlu0 %v27_v1, %s448_s19  ;;  %82 = vperm.xlu1 %398, %v56_v3   ;;  %v385_v36 = vld [vmem:[%s520_s1 + $0x4] sm:$0xf]  ;;  %v389_v42 = vld [vmem:[%s521_s2 + $0x8] sm:$0xf]  ;;  %s375_s4 = sshll.u32 %s451_s30, 4  ;;  %s376_s4 = int_to_ptr.vmem [resolvable:$true] %s375_s4 }
  0x11   :  { %v30_v7 = vadd.s32 128, %v478_v6  ;;  %vm64_vm0 = vcmp.lt.s32.totalorder %v478_v6, 1  ;;  %vm67_vm1 = vcmp.ge.s32.totalorder %v478_v6, 1  ;;  %vm168_vm5 = vcmp.lt.s32.totalorder %v478_v6, 2  ;;  %v388_v53 = vld [vmem:[%s520_s1 + $0x8] sm:$0xf]  ;;  %p426_p6 = scmp.lt.s32.totalorder %s376_s4, %s376_s4 }
  0x12   :  { %vm171_vm6 = vcmp.ge.s32.totalorder %v478_v6, 2  ;;  %vm270_vm8 = vcmp.lt.s32.totalorder %v478_v6, 4  ;;  %vm273_vm9 = vcmp.ge.s32.totalorder %v478_v6, 4  ;;  %s421_s5 = scalar_lea.vmem %s376_s4, 128 }
  0x13   :  { %v481_v8 = vand.u32 127, %v30_v7  ;;  %p422_p5 = scmp.ne.s32.totalorder %s376_s4, %s421_s5  ;;  %p427_p7 = scmp.lt.s32.totalorder %s421_s5, %s421_s5 }
  0x14   :  { %62 = vrot.lane.b32.xlu0 %v58_v4, %s448_s19 }
  0x15   :  { %vm68_vm2 = vcmp.ge.s32.totalorder %v481_v8, 1  ;;  %vm172_vm7 = vcmp.ge.s32.totalorder %v481_v8, 2  ;;  %vm274_vm10 = vcmp.ge.s32.totalorder %v481_v8, 4  ;;  %p428_p8 = por %p427_p7, %p426_p6 }
  0x17   :  { %p429_p9 = pnand %p428_p8, %p422_p5 }
  0x82   :  { %v61_v9 = vpop.permute.xlu0 %60 }
  0x86   :  { %v63_v10 = vpop.permute.xlu0 %62 }
  0x87   :  { %v65_v11 = vsel %vm64_vm0, %v61_v9, %v63_v10  ;;  %v66_v12 = vsel %vm64_vm0, %v63_v10, %v61_v9 }
  0x88   :  { %v69_v13 = vsel %vm67_vm1, %v66_v12, 0.0  ;;  %v70_v14 = vsel %vm68_vm2, %v65_v11, 0.0 }
  0x89   :  { %v73_v15 = vrot.slane %v69_v13, 4  ;;  %v74_v16 = vrot.slane %v70_v14, 4 }
  0x8b   :  { %v79_v17 = vsel %vm77_vm3, %v58_v4, %v74_v16  ;;  %v78_v18 = vsel %vm77_vm3, %v27_v1, %v73_v15  ;;  %v83_v20 = vpop.permute.xlu1 %82 }
  0x8c   :  { %119 = vmatprep.subr.mxu0 %v79_v17 }
  0x8d   :  { %120 = vmatpush1.msra.mxu0 %v78_v18 }
  0x8e   :  { %384 = vmatmul.mubr.msk.f32.vlgmr.msra.gmra.mxu0 %vm85_vm4, %v55_v19 }
  0x8f   :  { %357 = vmatprep.mubr.f32.mxu0 %v446_v0 }
 0x14e   :  { %v155_v21 = vpop.f32.mrf.mxu0 }
 0x14f   :  { %v156_v22 = vadd.f32 %v155_v21, %v83_v20 }
 0x150   :  { %v157_v23 = vpop.f32.mrf.mxu0 }
 0x151   :  { %v158_v24 = vadd.f32 %v157_v23, %v83_v20  ;;  %164 = vrot.lane.b32.xlu1 %v156_v22, %s449_s21 }
 0x153   :  { %166 = vrot.lane.b32.xlu0 %v158_v24, %s449_s21 }
 0x155   :  { %185 = vperm.xlu1 %398, %v386_v25  }
 0x1c3   :  { %v165_v26 = vpop.permute.xlu1 %164 }
 0x1c5   :  { %v167_v27 = vpop.permute.xlu0 %166 }
 0x1c6   :  { %v169_v28 = vsel %vm168_vm5, %v165_v26, %v167_v27  ;;  %v170_v29 = vsel %vm168_vm5, %v167_v27, %v165_v26 }
 0x1c7   :  { %v173_v30 = vsel %vm171_vm6, %v170_v29, 0.0  ;;  %v174_v31 = vsel %vm172_vm7, %v169_v28, 0.0 }
 0x1c8   :  { %v177_v32 = vrot.slane %v173_v30, 4  ;;  %v178_v33 = vrot.slane %v174_v31, 4 }
 0x1ca   :  { %v182_v34 = vsel %vm77_vm3, %v158_v24, %v178_v33  ;;  %v181_v35 = vsel %vm77_vm3, %v156_v22, %v177_v32 }
 0x1cb   :  { %221 = vmatprep.subr.mxu1 %v182_v34 }
 0x1cc   :  { %222 = vmatpush1.msra.mxu1 %v181_v35 }
 0x1cd   :  { %387 = vmatmul.mubr.msk.f32.vlgmr.msra.gmra.mxu1 %vm85_vm4, %v385_v36 }
 0x1d0   :  { %v186_v37 = vpop.permute.xlu1 %185 }
 0x28d   :  { %v257_v38 = vpop.f32.mrf.mxu1 }
 0x28e   :  { %v258_v39 = vadd.f32 %v257_v38, %v186_v37 }
 0x28f   :  { %v259_v40 = vpop.f32.mrf.mxu1 }
 0x290   :  { %v260_v41 = vadd.f32 %v259_v40, %v186_v37  ;;  %266 = vrot.lane.b32.xlu0 %v258_v39, %s450_s26 }
 0x292   :  { %268 = vrot.lane.b32.xlu1 %v260_v41, %s450_s26 }
 0x294   :  { %287 = vperm.xlu0 %399, %v389_v42  }
 0x302   :  { %v267_v43 = vpop.permute.xlu0 %266 }
 0x304   :  { %v269_v44 = vpop.permute.xlu1 %268 }
 0x305   :  { %v271_v45 = vsel %vm270_vm8, %v267_v43, %v269_v44  ;;  %v272_v46 = vsel %vm270_vm8, %v269_v44, %v267_v43 }
 0x306   :  { %v275_v47 = vsel %vm273_vm9, %v272_v46, 0.0  ;;  %v276_v48 = vsel %vm274_vm10, %v271_v45, 0.0 }
 0x307   :  { %v279_v49 = vrot.slane %v275_v47, 4  ;;  %v280_v50 = vrot.slane %v276_v48, 4 }
 0x309   :  { %v284_v51 = vsel %vm77_vm3, %v260_v41, %v280_v50  ;;  %v283_v52 = vsel %vm77_vm3, %v258_v39, %v279_v49 }
 0x30a   :  { %323 = vmatprep.subr.mxu0 %v284_v51 }
 0x30b   :  { %324 = vmatpush1.msra.mxu0 %v283_v52 }
 0x30c   :  { %390 = vmatmul.mubr.msk.f32.vlgmr.msra.gmra.mxu0 %vm85_vm4, %v388_v53 }
 0x30f   :  { %v288_v55 = vpop.permute.xlu0 %287 }
 0x3cc   :  { %v359_v54 = vpop.f32.mrf.mxu0 }
 0x3cd   :  { %v360_v57 = vadd.f32 %v359_v54, %v288_v55 }
 0x3ce   :  { %v361_v56 = vpop.f32.mrf.mxu0 }
 0x3cf   :  { %v362_v58 = vadd.f32 %v361_v56, %v288_v55 }
 0x3d1   :  { %v366_v59 = vcombine.low %v360_v57, %v362_v58 }
 0x3d3   :  { %368 = vst [vmem:[#allocation5] sm:$0xff] %v366_v59 }
 0x3d4   :  { %432 = shalt.err (!%p429_p9)
}
 0x3d5   :  { %378 = dma.vmem_to_hbm [thread:$0]  %s376_s4, 128, %s522_s3, [#allocation4]  }
 0x3d6   :  { %443 = dma.done.wait [#allocation4], 128  }
 0x3d7   :  { %444 = vsyncadd [#allocation4], 4294967168 }
 0x3d8   :  { %382 = vsyncpa [#allocation3], 1 }
 0x3d9   :  { %383 = vsyncpa [#allocation4], 1 }

</bundles_post_ra>
